<compile_context>
chip_gen: v6e
topology: v6e:2x2x1
jax: 0.10.0
libtpu: 0.0.40
codegen_flags: <defaults>
</compile_context>

<pallas_src>
import functools

import jax
import jax.numpy as jnp
from jax.experimental import pallas as pl
from jax.experimental.pallas import tpu as pltpu

_LANE = 128


def _round_up(n, m):
    return (n + m - 1) // m * m


def _sublane(itemsize):
    # Sublane packing: f32 -> 8, bf16 -> 16, int8/fp8 -> 32.
    return max(8, 32 // int(itemsize))


def _vmem_tile_bytes(rows, cols, itemsize):
    """VMEM footprint of one (rows, cols) tile after (sublane, lane) padding."""
    return _round_up(rows, _sublane(itemsize)) * _round_up(cols, _LANE) * itemsize


def _tpu_budgets():
    """(input-block budget, vmem_limit_bytes, single_core) per TPU generation."""
    kind = ""
    try:
        kind = jax.devices()[0].device_kind.lower()
    except Exception:
        pass
    single_core = any(t in kind for t in ("v5e", "v5 lite", "v6e", "v6 lite", "v6"))
    if "v5" in kind or "v6" in kind:
        # 128 MiB VMEM parts: bigger blocks keep bigger images on the fused path.
        return 16 * 1024 * 1024, 96 * 1024 * 1024, single_core
    # v7x (64 MiB VMEM) and unknown parts: stay conservative.
    return 8 * 1024 * 1024, 48 * 1024 * 1024, single_core


# ----------------------------------------------------------------------------
# Path A: fused single pass (whole image(s) per block).
# ----------------------------------------------------------------------------
def _l_color_fused_kernel(x_ref, o_ref, *, inv_hw):
    # x_ref / o_ref: (bt, 3, R, Cs) blocks in the ORIGINAL dtype (whole images).
    g = x_ref[:, 1].astype(jnp.float32)                         # (bt, R, Cs)
    b = x_ref[:, 2].astype(jnp.float32)
    # Per-image channel means in f32 (divide by the true H*W).
    mg = jnp.sum(g, axis=(-2, -1), keepdims=True) * inv_hw      # (bt, 1, 1)
    mb = jnp.sum(b, axis=(-2, -1), keepdims=True) * inv_hw
    r = x_ref[:, 0].astype(jnp.float32)
    d_rg = r - mg
    d_rb = r - mb
    d_bg = b - mg
    o_ref[:, 0] = (d_rg * d_rg).astype(o_ref.dtype)             # (r - mean_g)^2
    o_ref[:, 1] = (d_rb * d_rb).astype(o_ref.dtype)             # (r - mean_b)^2
    o_ref[:, 2] = (d_bg * d_bg).astype(o_ref.dtype)             # (b - mean_g)^2


# ----------------------------------------------------------------------------
# Path B, pass 1: row-tiled per-image sums of the g and b channels only.
# ----------------------------------------------------------------------------
def _sum_gb_kernel(g_ref, b_ref, s_ref, *, total_rows):
    # g_ref / b_ref: (tr, Cs) tiles (batch & channel squeezed);
    # s_ref: (2, Cs) f32 lane-partial accumulator, resident across row tiles.
    t = pl.program_id(1)
    tr = g_ref.shape[0]

    @pl.when(t == 0)
    def _():
        s_ref[...] = jnp.zeros_like(s_ref)

    g = g_ref[...].astype(jnp.float32)
    b = b_ref[...].astype(jnp.float32)
    if total_rows % tr != 0:   # static: mask the ragged last row tile only
        row = jax.lax.broadcasted_iota(jnp.int32, g.shape, 0) + t * tr
        valid = row < total_rows
        g = jnp.where(valid, g, 0.0)
        b = jnp.where(valid, b, 0.0)
    sg = jnp.sum(g, axis=0, keepdims=True)                       # (1, Cs)
    sb = jnp.sum(b, axis=0, keepdims=True)                       # (1, Cs)
    s_ref[...] += jnp.concatenate([sg, sb], axis=0)              # (2, Cs)


# ----------------------------------------------------------------------------
# Path B, pass 2: row-tiled elementwise pass on r / b only, means from SMEM.
# ----------------------------------------------------------------------------
def _l_color_elem_kernel(means_ref, r_ref, b_ref, o_ref):
    # means_ref: flat f32 [mg0, mb0, mg1, mb1, ...] in SMEM;
    # r_ref / b_ref: (tr, Cs) tiles; o_ref: (3, tr, Cs).
    i = pl.program_id(0)
    mg = means_ref[2 * i]
    mb = means_ref[2 * i + 1]
    r = r_ref[...].astype(jnp.float32)
    b = b_ref[...].astype(jnp.float32)
    d_rg = r - mg
    d_rb = r - mb
    d_bg = b - mg
    o_ref[0] = (d_rg * d_rg).astype(o_ref.dtype)
    o_ref[1] = (d_rb * d_rb).astype(o_ref.dtype)
    o_ref[2] = (d_bg * d_bg).astype(o_ref.dtype)


def l_color(x, *, max_block_bytes=None):
    """L_color forward. x: (B, 3, H, W) NCHW. Returns (B, 3, H, W), same dtype."""
    B, C, H, W = x.shape
    assert C == 3, "L_color expects exactly 3 channels (r, g, b)"
    dtype = x.dtype
    itemsize = jnp.dtype(dtype).itemsize
    hw = H * W
    inv_hw = 1.0 / float(hw)

    budget, vmem_limit, single_core = _tpu_budgets()
    if max_block_bytes is not None:
        budget = max_block_bytes

    # Spatial view: free lane-dense reshape when hw % 128 == 0, else raw (H, W).
    if hw % _LANE == 0:
        R, Cs = hw // _LANE, _LANE
        x_view = x.reshape(B, C, R, Cs)
    else:
        R, Cs = H, W
        x_view = x

    per_image_vmem = C * _vmem_tile_bytes(R, Cs, itemsize)

    use_fused = per_image_vmem <= budget
    if use_fused and B == 1 and not single_core and per_image_vmem > (2 << 20):
        # A single fused grid step would leave the second TensorCore idle on
        # megacore parts; the two-pass path shards its row tiles across cores.
        use_fused = False

    if use_fused:
        # ---- fused single pass: whole image(s) per block --------------------
        bt = max(1, min(B, budget // max(per_image_vmem, 1)))
        if B >= 2:
            bt = min(bt, (B + 1) // 2)      # guarantee >= 2 parallel grid steps
        grid = (pl.cdiv(B, bt),)            # non-divisor bt OK (partial last block)

        out_view = pl.pallas_call(
            functools.partial(_l_color_fused_kernel, inv_hw=inv_hw),
            out_shape=jax.ShapeDtypeStruct((B, C, R, Cs), dtype),
            grid_spec=pltpu.PrefetchScalarGridSpec(
                num_scalar_prefetch=0,
                grid=grid,
                in_specs=[pl.BlockSpec((bt, C, R, Cs), lambda i: (i, 0, 0, 0))],
                out_specs=pl.BlockSpec((bt, C, R, Cs), lambda i: (i, 0, 0, 0)),
            ),
            compiler_params=pltpu.CompilerParams(
                dimension_semantics=("parallel",),
                vmem_limit_bytes=vmem_limit,
            ),
            cost_estimate=pl.CostEstimate(
                flops=8 * B * C * hw, transcendentals=0,
                bytes_accessed=2 * B * C * hw * itemsize),
        )(x_view)
    else:
        # ---- two-pass: tiled g/b-sum reduction, then tiled elementwise ------
        sub = _sublane(itemsize)
        row_bytes = C * _round_up(Cs, _LANE) * itemsize          # 3-channel row
        tr = max(sub, (budget // max(row_bytes, 1)) // sub * sub)
        tr = min(tr, _round_up(R, sub))
        n_tiles = pl.cdiv(R, tr)                                 # ragged tail OK

        # Pass 1: per-image lane-partial sums of g and b (only 2 of 3 channels
        # are DMA'd).  The final lane reduce + divide on the tiny (B, 2, Cs)
        # result is wrapper glue on a negligible array.
        sums = pl.pallas_call(
            functools.partial(_sum_gb_kernel, total_rows=R),
            out_shape=jax.ShapeDtypeStruct((B, 2, Cs), jnp.float32),
            grid_spec=pltpu.PrefetchScalarGridSpec(
                num_scalar_prefetch=0,
                grid=(B, n_tiles),
                in_specs=[
                    pl.BlockSpec((pl.Squeezed(), pl.Squeezed(), tr, Cs),
                                 lambda b, t: (b, 1, t, 0)),     # g channel
                    pl.BlockSpec((pl.Squeezed(), pl.Squeezed(), tr, Cs),
                                 lambda b, t: (b, 2, t, 0)),     # b channel
                ],
                out_specs=pl.BlockSpec((pl.Squeezed(), 2, Cs),
                                       lambda b, t: (b, 0, 0)),
            ),
            compiler_params=pltpu.CompilerParams(
                dimension_semantics=("parallel", "arbitrary"),
                vmem_limit_bytes=vmem_limit,
            ),
            cost_estimate=pl.CostEstimate(
                flops=2 * B * hw, transcendentals=0,
                bytes_accessed=2 * B * hw * itemsize),
        )(x_view, x_view)
        # Flat [mg0, mb0, mg1, mb1, ...] for SMEM (1-D avoids 2-D SMEM padding).
        means_flat = (jnp.sum(sums, axis=-1) * inv_hw).reshape(2 * B)

        # Pass 2: elementwise on r / b only, means read from SMEM, fully parallel.
        out_view = pl.pallas_call(
            _l_color_elem_kernel,
            out_shape=jax.ShapeDtypeStruct((B, C, R, Cs), dtype),
            grid_spec=pltpu.PrefetchScalarGridSpec(
                num_scalar_prefetch=0,
                grid=(B, n_tiles),
                in_specs=[
                    pl.BlockSpec(memory_space=pltpu.MemorySpace.SMEM),
                    pl.BlockSpec((pl.Squeezed(), pl.Squeezed(), tr, Cs),
                                 lambda b, t: (b, 0, t, 0)),     # r channel
                    pl.BlockSpec((pl.Squeezed(), pl.Squeezed(), tr, Cs),
                                 lambda b, t: (b, 2, t, 0)),     # b channel
                ],
                out_specs=pl.BlockSpec((pl.Squeezed(), C, tr, Cs),
                                       lambda b, t: (b, 0, t, 0)),
            ),
            compiler_params=pltpu.CompilerParams(
                dimension_semantics=("parallel", "parallel"),
                vmem_limit_bytes=vmem_limit,
            ),
            cost_estimate=pl.CostEstimate(
                flops=6 * B * hw, transcendentals=0,
                bytes_accessed=5 * B * hw * itemsize),
        )(means_flat, x_view, x_view)

    # Free reshape back to NCHW (no data movement: same contiguous buffer).
    return out_view.reshape(B, C, H, W)


def _l_color_ref(x):
    # Pure-JAX reference matching the PyTorch module (computed in f32).
    xf = x.astype(jnp.float32)
    mean_rgb = jnp.mean(xf, axis=(2, 3), keepdims=True)          # (B,3,1,1)
    mg = mean_rgb[:, 1:2]
    mb = mean_rgb[:, 2:3]
    r = xf[:, 0:1]
    b = xf[:, 2:3]
    return jnp.concatenate(
        [(r - mg) ** 2, (r - mb) ** 2, (b - mg) ** 2], axis=1)


if __name__ == "__main__":
    keys = jax.random.split(jax.random.PRNGKey(0), 5)

    # 1) Small NCHW, hw % 128 == 0 -> free lane-dense view, fused path.
    x = jax.random.uniform(keys[0], (2, 3, 16, 16), dtype=jnp.float32)
    out = jax.block_until_ready(l_color(x))
    assert out.shape == x.shape and out.dtype == x.dtype
    assert jnp.allclose(out, _l_color_ref(x), atol=1e-5, rtol=1e-5)

    # 2) Ragged hw (100 not a multiple of 128) -> raw (H, W) blocks, no padding.
    x2 = jax.random.uniform(keys[1], (2, 3, 10, 10), dtype=jnp.float32)
    out2 = jax.block_until_ready(l_color(x2))
    assert jnp.allclose(out2, _l_color_ref(x2), atol=1e-5, rtol=1e-5)

    # 3) Forced two-pass path with a ragged row-tile tail (masked reduction).
    x3 = jax.random.uniform(keys[2], (2, 3, 41, 52), dtype=jnp.float32)
    out3 = jax.block_until_ready(l_color(x3, max_block_bytes=8 * 1024))
    assert jnp.allclose(out3, _l_color_ref(x3), atol=1e-5, rtol=1e-5)

    # 4) Forced two-pass on a lane-dense view (hw % 128 == 0), B == 1.
    x4 = jax.random.uniform(keys[3], (1, 3, 56, 64), dtype=jnp.float32)
    out4 = jax.block_until_ready(l_color(x4, max_block_bytes=8 * 1024))
    assert jnp.allclose(out4, _l_color_ref(x4), atol=1e-5, rtol=1e-5)

    # 5) bf16 input: DMA'd in bf16, mean accumulated in f32, stored in bf16.
    x5 = jax.random.uniform(keys[4], (2, 3, 16, 16),
                            dtype=jnp.float32).astype(jnp.bfloat16)
    out5 = jax.block_until_ready(l_color(x5))
    assert out5.dtype == jnp.bfloat16
    assert jnp.allclose(out5.astype(jnp.float32),
                        _l_color_ref(x5), atol=2e-2, rtol=2e-2)

    print("KERNEL_OK")
</pallas_src>

<mosaic_0001>
module attributes {stable_mosaic.version = 11 : i64} {
  func.func @_l_color_fused_kernel(%arg0: i32, %arg1: memref<1x3x2x128xf32, #tpu.memory_space<vmem>>, %arg2: memref<1x3x2x128xf32, #tpu.memory_space<vmem>>) attributes {dimension_semantics = [#tpu.dimension_semantics<parallel>], iteration_bounds = array<i64: 2>, scalar_prefetch = 0 : i64, scratch_operands = 0 : i64, tpu.core_type = #tpu.core_type<tc>, window_params = [{transform_indices = @transform_0, window_bounds = array<i64: 1, 3, 2, 128>}, {transform_indices = @transform_1, window_bounds = array<i64: 1, 3, 2, 128>}]} {
    %c0 = arith.constant 0 : index
    %c1 = arith.constant 1 : index
    %c0_0 = arith.constant 0 : index
    %c0_1 = arith.constant 0 : index
    %0 = vector.load %arg1[%c0, %c1, %c0_0, %c0_1] : memref<1x3x2x128xf32, #tpu.memory_space<vmem>>, vector<1x1x2x128xf32>
    %1 = vector.shape_cast %0 : vector<1x1x2x128xf32> to vector<1x2x128xf32>
    %c0_2 = arith.constant 0 : index
    %c2 = arith.constant 2 : index
    %c0_3 = arith.constant 0 : index
    %c0_4 = arith.constant 0 : index
    %2 = vector.load %arg1[%c0_2, %c2, %c0_3, %c0_4] : memref<1x3x2x128xf32, #tpu.memory_space<vmem>>, vector<1x1x2x128xf32>
    %3 = vector.shape_cast %2 : vector<1x1x2x128xf32> to vector<1x2x128xf32>
    %cst = arith.constant dense<0.000000e+00> : vector<1xf32>
    %4 = vector.multi_reduction <add>, %1, %cst [1, 2] : vector<1x2x128xf32> to vector<1xf32>
    %5 = vector.shape_cast %4 : vector<1xf32> to vector<1x1x1xf32>
    %cst_5 = arith.constant 3.906250e-03 : f32
    %6 = vector.broadcast %cst_5 : f32 to vector<1x1x1xf32>
    %7 = arith.mulf %5, %6 : vector<1x1x1xf32>
    %cst_6 = arith.constant dense<0.000000e+00> : vector<1xf32>
    %8 = vector.multi_reduction <add>, %3, %cst_6 [1, 2] : vector<1x2x128xf32> to vector<1xf32>
    %9 = vector.shape_cast %8 : vector<1xf32> to vector<1x1x1xf32>
    %cst_7 = arith.constant 3.906250e-03 : f32
    %10 = vector.broadcast %cst_7 : f32 to vector<1x1x1xf32>
    %11 = arith.mulf %9, %10 : vector<1x1x1xf32>
    %c0_8 = arith.constant 0 : index
    %c0_9 = arith.constant 0 : index
    %c0_10 = arith.constant 0 : index
    %c0_11 = arith.constant 0 : index
    %12 = vector.load %arg1[%c0_8, %c0_9, %c0_10, %c0_11] : memref<1x3x2x128xf32, #tpu.memory_space<vmem>>, vector<1x1x2x128xf32>
    %13 = vector.shape_cast %12 : vector<1x1x2x128xf32> to vector<1x2x128xf32>
    %14 = vector.broadcast %7 : vector<1x1x1xf32> to vector<1x2x128xf32>
    %15 = arith.subf %13, %14 : vector<1x2x128xf32>
    %16 = vector.broadcast %11 : vector<1x1x1xf32> to vector<1x2x128xf32>
    %17 = arith.subf %13, %16 : vector<1x2x128xf32>
    %18 = vector.broadcast %7 : vector<1x1x1xf32> to vector<1x2x128xf32>
    %19 = arith.subf %3, %18 : vector<1x2x128xf32>
    %20 = arith.mulf %15, %15 : vector<1x2x128xf32>
    %c0_12 = arith.constant 0 : index
    %c0_13 = arith.constant 0 : index
    %c0_14 = arith.constant 0 : index
    %c0_15 = arith.constant 0 : index
    %21 = vector.load %arg2[%c0_12, %c0_13, %c0_14, %c0_15] : memref<1x3x2x128xf32, #tpu.memory_space<vmem>>, vector<1x1x2x128xf32>
    %22 = vector.shape_cast %21 : vector<1x1x2x128xf32> to vector<1x2x128xf32>
    %23 = vector.shape_cast %20 : vector<1x2x128xf32> to vector<1x1x2x128xf32>
    tpu.vector_store %arg2[%c0_12, %c0_13, %c0_14, %c0_15], %23 {strides = array<i32>} : memref<1x3x2x128xf32, #tpu.memory_space<vmem>>, vector<1x1x2x128xf32>,
    %24 = arith.mulf %17, %17 : vector<1x2x128xf32>
    %c0_16 = arith.constant 0 : index
    %c1_17 = arith.constant 1 : index
    %c0_18 = arith.constant 0 : index
    %c0_19 = arith.constant 0 : index
    %25 = vector.load %arg2[%c0_16, %c1_17, %c0_18, %c0_19] : memref<1x3x2x128xf32, #tpu.memory_space<vmem>>, vector<1x1x2x128xf32>
    %26 = vector.shape_cast %25 : vector<1x1x2x128xf32> to vector<1x2x128xf32>
    %27 = vector.shape_cast %24 : vector<1x2x128xf32> to vector<1x1x2x128xf32>
    tpu.vector_store %arg2[%c0_16, %c1_17, %c0_18, %c0_19], %27 {strides = array<i32>} : memref<1x3x2x128xf32, #tpu.memory_space<vmem>>, vector<1x1x2x128xf32>,
    %28 = arith.mulf %19, %19 : vector<1x2x128xf32>
    %c0_20 = arith.constant 0 : index
    %c2_21 = arith.constant 2 : index
    %c0_22 = arith.constant 0 : index
    %c0_23 = arith.constant 0 : index
    %29 = vector.load %arg2[%c0_20, %c2_21, %c0_22, %c0_23] : memref<1x3x2x128xf32, #tpu.memory_space<vmem>>, vector<1x1x2x128xf32>
    %30 = vector.shape_cast %29 : vector<1x1x2x128xf32> to vector<1x2x128xf32>
    %31 = vector.shape_cast %28 : vector<1x2x128xf32> to vector<1x1x2x128xf32>
    tpu.vector_store %arg2[%c0_20, %c2_21, %c0_22, %c0_23], %31 {strides = array<i32>} : memref<1x3x2x128xf32, #tpu.memory_space<vmem>>, vector<1x1x2x128xf32>,
    return
  }
  func.func @transform_0(%arg0: i32) -> (i32, i32, i32, i32) {
    %c0_i32 = arith.constant 0 : i32
    %c0_i32_0 = arith.constant 0 : i32
    %c0_i32_1 = arith.constant 0 : i32
    %c0_i32_2 = arith.constant 0 : i32
    return %arg0, %c0_i32, %c0_i32_0, %c0_i32_1 : i32, i32, i32, i32
  }
  func.func @transform_1(%arg0: i32) -> (i32, i32, i32, i32) {
    %c0_i32 = arith.constant 0 : i32
    %c0_i32_0 = arith.constant 0 : i32
    %c0_i32_1 = arith.constant 0 : i32
    %c0_i32_2 = arith.constant 0 : i32
    return %arg0, %c0_i32, %c0_i32_0, %c0_i32_1 : i32, i32, i32, i32
  }
}

</mosaic_0001>

<bundles_post_ra>
// kernel: tpu_custom_call.1
= control target key start
LH: loop header
LB: loop body
LE: loop exit
PB: predicated region body
PF: predicated region fallthrough
CT: control target
= control target key end

     0   :  { %6 = vsyncpa [#allocation3], 0  ;;  %s587_s0 = inlined_call_operand.hbm [shape: f32[2,3,2,128], index: 0, kind: input, shape index: {}]   ;;  %s588_s1 = inlined_call_operand.hbm [shape: f32[2,3,2,128], index: 1, kind: output, shape index: {}]  }
   0x1   :  { %8 = vsyncpa [#allocation3 + $0x1], 0 }
   0x2   :  { %9 = vsyncpa [#allocation4], 0 }
   0x3   :  { %11 = vsyncpa [#allocation4 + $0x1], 0  ;;  %s435_s6 = smov 0   ;;  %s437_s7 = smov 0  }
   0x4   :  { %s439_s8 = smov 0   ;;  %s441_s9 = smov 0  }
   0x5 LB: > { %s456_s10 = sadd.s32 4294967295, %s417_s9   ;;  %s259_s11 = sadd.s32 4294967294, %s417_s9   ;;  %s417_s9 = sphi %s441_s9, %s602_s9   ;;  %s413_s8 = sphi %s439_s8, %s601_s8   ;;  %s409_s7 = sphi %s437_s7, %s600_s7   ;;  %s405_s6 = sphi %s435_s6, %s599_s6  }
   0x6   : > { %s460_s12 = sadd.s32 1, %s417_s9   ;;  %s24_s13 = sadd.s32 1, %s413_s8 }
   0x7   : > { %s21_s14 = ssub.s32 %s417_s9, %s460_s12  ;;  %p31_p0 = scmp.ne.s32.totalorder %s413_s8, %s409_s7 }
   0x8   : > { %p22_p1 = scmp.eq.s32.totalorder %s21_s14, 0  ;;  %p32_p2 = scmp.eq.s32.totalorder %s417_s9, 0 }
   0x9   : > { %p37_p3 = scmp.ne.s32.totalorder %s409_s7, %s405_s6  ;;  %p38_p4 = scmp.eq.s32.totalorder %s456_s10, 0 }
   0xa   : > { %s472_s15 = scalar_select %p22_p1, %s413_s8, %s24_s13  }
   0xb   : > { %p33_p5 = por %p32_p2, %p31_p0  ;;  %p474_p6 = por %p38_p4, %p37_p3 }
   0xc   : > { %p61_p7 = scmp.eq.s32.totalorder %s456_s10, 1  ;;  %p67_p8 = scmp.eq.s32.totalorder %s259_s11, 1 }
   0xd   : > { %s591_s16 = scalar_select %p474_p6, 1, 0 }
   0xe   : > { %p287_p10 = scmp.lt.s32.totalorder %s417_s9, 2  ;;  %p481_p11 = por %p61_p7, %p31_p0 }
   0xf   : > { %p485_p12 = por %p67_p8, %p37_p3  ;;  %s87_s19 = sand.u32 1, %s413_s8  }
  0x10   : > { %s592_s17 = scalar_select %p481_p11, 1, 0 }
  0x11   : > { %s593_s18 = scalar_select %p485_p12, 1, 0 }
  0x12   : > { %s272_s20 = smul.u32 96, %s417_s9  ;;  %p496_p13 = pnand %p287_p10, %p33_p5 }
  0x13   : > { %s271_s21 = smul.u32 6, %s87_s19  ;;  %s502_s28 = scalar_lea.sflag [#allocation3], %s87_s19 }
  0x14   : > { %s494_s24 = scalar_lea.hbm %s587_s0, %s272_s20  ;;  %p327_p1 = pneg %p496_p13 }
  0x15   : > { %s91_s26 = scalar_lea.vmem [#allocation2], %s271_s21  ;;  %s325_s29 = scalar_lea.hbm %s494_s24, 96 }
  0x16   : > { %s98_s27 = sshll.u32 %s91_s26, 4  ;;  %p326_p0 = scmp.ne.s32.totalorder %s494_s24, %s325_s29  ;;  %s500_s27 = int_to_ptr.vmem [resolvable:$true] %s98_s27 }
  0x17   : > { %s330_s3 = scalar_lea.hbm %s587_s0, 192  ;;  %p331_p4 = scmp.lt.s32.totalorder %s494_s24, %s587_s0 }
  0x18   : > { %p328_p2 = pnand %p327_p1, %p326_p0  ;;  %p332_p5 = scmp.lt.s32.totalorder %s330_s3, %s325_s29 }
  0x1a   : > { %p329_p3 = pneg %p328_p2  ;;  %p333_p7 = por %p332_p5, %p331_p4 }
  0x1c   : > { %p334_p8 = pnand %p333_p7, %p329_p3 }
  0x1e   : > { %337 = shalt.err (!%p334_p8)
}
  0x1f   : > { %s338_s11 = scalar_lea.vmem %s500_s27, 96  ;;  %s419_s13 = smov [#allocation2]  }
  0x20   : > { %p339_p10 = scmp.ne.s32.totalorder %s500_s27, %s338_s11  ;;  %s343_s14 = sshll.u32 %s419_s13, 4  ;;  %s344_s14 = int_to_ptr.vmem [resolvable:$false] %s343_s14 }
  0x21   : > { %s345_s19 = scalar_lea.vmem %s344_s14, 192  ;;  %p346_p2 = scmp.lt.s32.totalorder %s500_s27, %s344_s14 }
  0x22   : > { %p341_p9 = pnand %p339_p10, %p327_p1  ;;  %p347_p12 = scmp.lt.s32.totalorder %s345_s19, %s338_s11 }
  0x24   : > { %p342_p0 = pneg %p341_p9  ;;  %p348_p11 = por %p347_p12, %p346_p2 }
  0x26   : > { %p349_p6 = pnand %p348_p11, %p342_p0 }
  0x28   : > { %352 = shalt.err (!%p349_p6)
}
  0x29   : > { %s420_s20 = smov 32   ;;  %s421_s21 = smov 2  }
  0x2a   : > { %282 = dma.hbm_to_vmem [thread:$0]  (!%p496_p13), %s494_s24, 96, %s500_s27, %s502_s28, %s420_s20, %s420_s20, %s421_s21  }
  0x2b   : > { %p263_p9 = scmp.ge.s32.totalorder %s417_s9, 1  ;;  %p106_p1 = scmp.lt.s32.totalorder %s417_s9, 3 }
  0x2d   : > { %p107_p3 = pnand %p263_p9, %p106_p1 }
  0x2e   : > { %s526_s22 = sand.u32 (!%p107_p3), 1, %s409_s7   ;;  %p595_p6 = scmp.ne.s32.totalorder (!%p107_p3), %s591_s16, 0 }
  0x2f   : > { %110 = sbr.rel (%p107_p3) target bundleno = 229 (0xe5), region = 24  ;;  %s113_s26 = scalar_lea.sflag (!%p107_p3), [#allocation3], %s526_s22 }
  0x30   : > { %s273_s23 = smul.u32 (!%p107_p3), 6, %s526_s22 }
  0x32   : > { %s116_s29 = scalar_lea.vmem (!%p107_p3), [#allocation2], %s273_s23 }
  0x34   : > { %396 = dma.done.wait (%p595_p6), %s113_s26, 96  }
  0x35   : > { %398 = vsyncadd (%p595_p6), %s113_s26, 4294967200  ;;  %vm139_vm0 = vcmask 1041408   ;;  %v264_v0 = vld [vmem:[%s116_s29 + $0x2] sm:$0x3]  ;;  %v265_v1 = vld [vmem:[%s116_s29 + $0x4] sm:$0x3] }
  0x36   : > { %v140_v2 = vsel %vm139_vm0, %v264_v0, 0.0  ;;  %v150_v3 = vsel %vm139_vm0, %v265_v1, 0.0  ;;  %v160_v16 = vld [vmem:[%s116_s29] sm:$0x3]  ;;  %s274_s16 = smul.u32 96, %s456_s10  ;;  %s134_s24 = scalar_lea.vmem [#allocation5], %s273_s23 }
  0x37   : > { %141 = vadd.xlane.f32.xlu0 %v140_v2  ;;  %s186_s25 = sshll.u32 %s134_s24, 4  ;;  %s173_s10 = scalar_lea.sflag [#allocation4], %s526_s22  ;;  %s544_s25 = int_to_ptr.vmem [resolvable:$true] %s186_s25 }
  0x38   : > { %s542_s30 = scalar_lea.hbm %s588_s1, %s274_s16  ;;  %s353_s2 = scalar_lea.vmem %s544_s25, 96 }
  0x39   : > { %p354_p11 = scmp.ne.s32.totalorder %s544_s25, %s353_s2  ;;  %p596_p12 = scmp.ne.s32.totalorder %s592_s17, 0 }
  0x3a   : > { %s422_s3 = smov [#allocation5]  }
  0x3b   : > { %151 = vadd.xlane.f32.xlu0 %v150_v3  ;;  %p355_p13 = pnand %p354_p11, %p596_p12  ;;  %s357_s4 = sshll.u32 %s422_s3, 4  ;;  %s358_s4 = int_to_ptr.vmem [resolvable:$false] %s357_s4 }
  0x3c   : > { %s359_s5 = scalar_lea.vmem %s358_s4, 192  ;;  %p360_p5 = scmp.lt.s32.totalorder %s544_s25, %s358_s4 }
  0x3d   : > { %p356_p4 = pneg %p355_p13  ;;  %p361_p7 = scmp.lt.s32.totalorder %s359_s5, %s353_s2 }
  0x3f   : > { %p362_p8 = por %p361_p7, %p360_p5 }
  0x41   : > { %p363_p10 = pnand %p362_p8, %p356_p4 }
  0xc0   : > { %v142_v4 = vpop.xlane.xlu0 %141 }
  0xc1   : > { %v143_v5 = vrot.slane %v142_v4, 4 }
  0xc3   : > { %v144_v6 = vadd.f32 %v143_v5, %v142_v4 }
  0xc4   : > { %v152_v7 = vpop.xlane.xlu0 %151 }
  0xc5   : > { %v145_v8 = vrot.slane %v144_v6, 2  ;;  %v153_v9 = vrot.slane %v152_v7, 4 }
  0xc7   : > { %v146_v10 = vadd.f32 %v145_v8, %v144_v6  ;;  %v154_v11 = vadd.f32 %v153_v9, %v152_v7 }
  0xc9   : > { %v147_v12 = vrot.slane %v146_v10, 1  ;;  %v155_v13 = vrot.slane %v154_v11, 2 }
  0xcb   : > { %v148_v14 = vadd.f32 %v147_v12, %v146_v10  ;;  %v156_v15 = vadd.f32 %v155_v13, %v154_v11 }
  0xcd   : > { %v149_v17 = vmul.f32 0.00390625, %v148_v14  ;;  %v157_v18 = vrot.slane %v156_v15, 1 }
  0xcf   : > { %v163_v19 = vsub.f32 %v265_v1, %v149_v17  ;;  %v161_v20 = vsub.f32 %v160_v16, %v149_v17  ;;  %v158_v21 = vadd.f32 %v157_v18, %v156_v15 }
  0xd1   : > { %v169_v22 = vmul.f32 %v163_v19, %v163_v19  ;;  %v164_v23 = vmul.f32 %v161_v20, %v161_v20  ;;  %v159_v24 = vmul.f32 0.00390625, %v158_v21 }
  0xd3   : > { %267 = vst [vmem:[%s134_s24 + $0x4] sm:$0x3] %v169_v22  ;;  %165 = vst [vmem:[%s134_s24] sm:$0x3] %v164_v23  ;;  %v162_v25 = vsub.f32 %v160_v16, %v159_v24 }
  0xd5   : > { %v166_v26 = vmul.f32 %v162_v25, %v162_v25 }
  0xd7   : > { %266 = vst [vmem:[%s134_s24 + $0x2] sm:$0x3] %v166_v26 }
  0xd8   : > { %366 = shalt.err (!%p363_p10)
}
  0xd9   : > { %s367_s11 = scalar_lea.hbm %s542_s30, 96  ;;  %s371_s19 = scalar_lea.hbm %s588_s1, 192 }
  0xda   : > { %p368_p0 = scmp.ne.s32.totalorder %s542_s30, %s367_s11  ;;  %p372_p1 = scmp.lt.s32.totalorder %s542_s30, %s588_s1 }
  0xdb   : > { %p373_p3 = scmp.lt.s32.totalorder %s371_s19, %s367_s11 }
  0xdc   : > { %p369_p2 = pnand %p368_p0, %p596_p12 }
  0xdd   : > { %p374_p6 = por %p373_p3, %p372_p1 }
  0xde   : > { %p370_p9 = pneg %p369_p2 }
  0xe0   : > { %p375_p11 = pnand %p374_p6, %p370_p9 }
  0xe2   : > { %378 = shalt.err (!%p375_p11)
}
  0xe3   : > { %s423_s23 = smov 32   ;;  %s424_s26 = smov 2  }
  0xe4   : > { %277 = dma.vmem_to_hbm [thread:$0]  (%p596_p12), %s544_s25, 96, %s542_s30, %s173_s10, %s423_s23, %s423_s23, %s424_s26  }
  0xe5 PF: > { %s201_s29 = sand.u32 1, %s405_s6   ;;  %p597_p13 = scmp.ne.s32.totalorder %s593_s18, 0 }
  0xe6   : > { %p598_p4 = scmp.ge.s32.totalorder %s417_s9, 2  ;;  %s202_s16 = scalar_lea.sflag [#allocation4], %s201_s29 }
  0xe8   : > { %p284_p5 = pnand %p598_p4, %p597_p13 }
  0xea   : > { %p285_p7 = pneg %p284_p5 }
  0xec   : > { %400 = dma.done.wait (%p285_p7), %s202_s16, 96  }
  0xed   : > { %402 = vsyncadd (%p285_p7), %s202_s16, 4294967200  ;;  %p14_p8 = scmp.ge.s32.totalorder %s460_s12, 4   ;;  %s599_s6 = smov %s409_s7 }
  0xee   : > { %s600_s7 = smov %s413_s8  ;;  %s601_s8 = smov %s472_s15 }
  0xef   : > { %s602_s9 = smov %s460_s12  ;;  %16 = sbr.rel (!%p14_p8) target bundleno = 5 (0x5), region = 73 }
  0xf4   :  { %207 = vsyncpa [#allocation3], 1 }
  0xf5   :  { %209 = vsyncpa [#allocation3 + $0x1], 1 }
  0xf6   :  { %210 = vsyncpa [#allocation4], 1 }
  0xf7   :  { %212 = vsyncpa [#allocation4 + $0x1], 1 }

</bundles_post_ra>
